<compile_context>
chip_gen: v7x
topology: tpu7x:2x2x1
jax: 0.10.0
libtpu: 0.0.40
codegen_flags: <defaults>
</compile_context>

<pallas_src>
import functools

import numpy as np
import jax
import jax.numpy as jnp
from jax import lax
from jax.experimental import pallas as pl
from jax.experimental.pallas import tpu as pltpu


# ---------------------------------------------------------------------------
# helpers
# ---------------------------------------------------------------------------
def conv2d_output_size(n, k, s, p, d=1):
    """PyTorch Conv2d / MaxPool2d output-size formula."""
    return (n + 2 * p - d * (k - 1) - 1) // s + 1


def _round_up(x, m):
    return ((x + m - 1) // m) * m


def _activation(x, name):
    # mirrors activations_lookup in the PyTorch module
    if name == "relu":
        return jnp.maximum(x, 0.0)
    if name == "sig":                         # 1/(1+exp(-x)), EUP-friendly
        return 1.0 / (1.0 + jnp.exp(-x))
    if name == "tanh":
        return jnp.tanh(x)
    if name == "lrelu":                       # nn.LeakyReLU default slope=0.01
        return jnp.where(x >= 0, x, 0.01 * x)
    if name == "elu":                         # nn.ELU default alpha=1.0
        return jnp.where(x >= 0, x, jnp.exp(jnp.minimum(x, 0.0)) - 1.0)
    raise ValueError(f"unknown activation: {name}")


# ---------------------------------------------------------------------------
# static planner for the fused (stride-1) path
#
# Every activation lives inside a fixed per-image frame of (FH, FW); the valid
# data of a stage occupies a rectangle (r, c, h, w) inside that frame.  Conv /
# pool taps become constant lane offsets o = dr*FW + dc, so each block is one
# matmul + a handful of XLU lane rotations.  All planning is static Python.
# ---------------------------------------------------------------------------
def _plan_axis(size0, cfgs, offset0):
    r, s = offset0, size0
    lo, hi = r, r + s
    recs = []
    for c in cfgs:
        k, p, d = c["conv_kernel"], c["conv_padding"], c["conv_dilation"]
        kp, pp, dp = c["pool_kernel"], c["pool_padding"], c["pool_dilation"]
        rec = {"in": (r, s)}
        lo, hi = min(lo, r - p), max(hi, r + s + p)
        r, s = r - p, s + 2 * p - d * (k - 1)          # conv (stride 1)
        rec["conv"] = (r, s)
        lo, hi = min(lo, r - pp), max(hi, r + s + pp)
        r, s = r - pp, s + 2 * pp - dp * (kp - 1)      # pool (stride 1)
        rec["out"] = (r, s)
        recs.append(rec)
    return lo, hi, recs


def _plan_fast(H0, W0, cfgs):
    lo_r, hi_r, _ = _plan_axis(H0, cfgs, 0)
    lo_c, hi_c, _ = _plan_axis(W0, cfgs, 0)
    A_r, A_c = -min(lo_r, 0), -min(lo_c, 0)
    FH, FW = hi_r + A_r, hi_c + A_c
    _, _, rrecs = _plan_axis(H0, cfgs, A_r)
    _, _, crecs = _plan_axis(W0, cfgs, A_c)
    blocks = [{k: (rr[k][0], cr[k][0], rr[k][1], cr[k][1])
               for k in ("in", "conv", "out")} for rr, cr in zip(rrecs, crecs)]
    # Static safety invariant (review): every conv/pool tap taken from a valid
    # output lane must stay inside the same image's (FH, FW) frame, so rolled /
    # wrapped lanes and cross-image neighbours only ever feed garbage lanes.
    for blk, cfg in zip(blocks, cfgs):
        for rect, kk, dd in (
                (blk["conv"], cfg["conv_kernel"], cfg["conv_dilation"]),
                (blk["out"], cfg["pool_kernel"], cfg["pool_dilation"])):
            r, c, h, w = rect
            assert h > 0 and w > 0, "conv/pool output collapsed to zero size"
            assert r >= 0 and c >= 0, "tap window escapes frame (top/left)"
            assert r + h - 1 + dd * (kk - 1) <= FH - 1, "tap escapes frame rows"
            assert c + w - 1 + dd * (kk - 1) <= FW - 1, "tap escapes frame cols"
    return dict(A_r=A_r, A_c=A_c, FH=FH, FW=FW, blocks=blocks)


# ---------------------------------------------------------------------------
# roll-direction probe: pltpu.roll is documented to follow jnp.roll
# (result[i] = x[i - shift]); verify once so the lane-shift direction cannot
# silently flip results on any libtpu / jax version.
# ---------------------------------------------------------------------------
@functools.lru_cache(maxsize=None)
def _roll_sign():
    def _probe(x_ref, o_ref):
        o_ref[...] = pltpu.roll(x_ref[...], 1, 1)

    x = jnp.broadcast_to(jnp.arange(128, dtype=jnp.float32), (8, 128))
    out = pl.pallas_call(
        _probe, out_shape=jax.ShapeDtypeStruct((8, 128), jnp.float32))(x)
    # jnp.roll-like => out[0] == x[-1] == 127 ; opposite convention => 1.
    return -1 if float(out[0, 0]) == 127.0 else 1


# ---------------------------------------------------------------------------
# generation-aware tiling / VMEM budget (review items: NT selection and
# explicit vmem_limit_bytes from a computed per-step footprint)
# ---------------------------------------------------------------------------
def _select_tiling(N, IS, cp0, c_lastp, kmax, cmax):
    try:
        kind = jax.devices()[0].device_kind.lower()
    except Exception:
        kind = ""
    two_tc = "v7" in kind                       # v7x: 2 TensorCores, 64 MiB VMEM
    vmem_budget = (48 << 20) if two_tc else (100 << 20)
    target_nt = 4 if two_tc else 2              # >=2 grid steps per core
    lane_floor = 128 if two_tc else 512         # keep lane round-up waste small

    def footprint(nt):
        nb = max(N // nt, 1)
        l = _round_up(nb * IS, 128)
        # 2x double-buffered input + 2x output + patch scratch + ~3 live temps
        return 4 * l * (2 * cp0 + 2 * c_lastp + kmax + 3 * cmax), l

    divisors = [d for d in range(1, N + 1) if N % d == 0]
    nt = 1
    for cand in sorted({c for c in (target_nt, 2, 1) if c in divisors},
                       reverse=True):
        if cand == 1 or (N // cand) * IS >= lane_floor:
            nt = cand
            break
    fp, L = footprint(nt)
    for cand in divisors:                       # grow NT if a tile won't fit
        if fp <= vmem_budget:
            break
        if cand <= nt:
            continue
        nt = cand
        fp, L = footprint(cand)
    vmem_limit = int(min(vmem_budget, max(32 << 20, 3 * fp)))
    return nt, L, vmem_limit


# ---------------------------------------------------------------------------
# fused encoder kernel (all conv blocks, one batch tile per grid step)
# ---------------------------------------------------------------------------
def _fused_encoder_kernel(x_ref, row_ref, col_ref, *rest,
                          cfgs, plan, cps, roll_sign):
    """
    x_ref:     (1, Cp0, L)   flat-frame input tile (channels padded to x8)
    row_ref:   (1, L) int32  frame-row of each lane (-1 in the lane tail)
    col_ref:   (1, L) int32  frame-col of each lane (-1 in the lane tail)
    rest:      w0, b0, w1, b1, ..., o_ref, patch_ref
               w_b: (Coutp_b, KH*KW*Cinp_b)   b_b: (Coutp_b, 1)
    o_ref:     (1, Coutp_last, L)
    patch_ref: (Kmax, L) f32 VMEM scratch, reused by every block's im2col.
    """
    o_ref, patch_ref = rest[-2], rest[-1]
    wb_refs = rest[:-2]
    FW = plan["FW"]

    a = x_ref[0]                                  # (Cp0, L) float32
    L = a.shape[-1]
    # hoisted out of the block loop (review); only consumed when a pad mask is
    # actually needed.  (In-kernel iota + int div/mod was rejected: vector
    # integer divide is a risky Mosaic lowering; two 1.5 KB inputs are free.)
    row = row_ref[...]
    col = col_ref[...]

    def rect_mask(rect):
        r, c, h, w = rect
        return (row >= r) & (row < r + h) & (col >= c) & (col < c + w)

    def lane_shift(arr, o):
        # result[:, l] = arr[:, l + o] -- XLU rotation, no vld/vst copies.
        # Wrapped lanes only ever feed garbage output lanes (see _plan_fast).
        if o == 0:
            return arr
        return pltpu.roll(arr, (roll_sign * o) % L, 1)

    for b, cfg in enumerate(cfgs):
        blk = plan["blocks"][b]
        cp = cps[b]                               # padded in-channels (x8)
        w = wb_refs[2 * b][...]
        bias = wb_refs[2 * b + 1][...]
        k, p, d = cfg["conv_kernel"], cfg["conv_padding"], cfg["conv_dilation"]
        kp, pp, dp = (cfg["pool_kernel"], cfg["pool_padding"],
                      cfg["pool_dilation"])

        # --- Conv2d: implicit im2col into the reused scratch + one matmul ---
        if b > 0 and p > 0:
            # emulate Conv2d zero padding (also kills -inf/NaN garbage lanes
            # left over from the previous block's pooling)
            a = jnp.where(rect_mask(blk["in"]), a, 0.0)
        offs = [(kh * d) * FW + kw * d for kh in range(k) for kw in range(k)]
        for t, o in enumerate(offs):
            patch_ref[t * cp:(t + 1) * cp, :] = lane_shift(a, o)
        K = len(offs) * cp
        # NOTE(review): Precision.HIGH was requested; the Mosaic dot_general
        # lowering only supports DEFAULT/HIGHEST, and at Cout<=16 the MXU has
        # large slack, so HIGHEST is kept for exact f32 parity.
        acc = jnp.dot(w, patch_ref[:K, :],
                      preferred_element_type=jnp.float32,
                      precision=jax.lax.Precision.HIGHEST) + bias
        act = _activation(acc, cfg["activation"])

        # --- MaxPool2d: -inf pad mask + running max over XLU lane shifts ----
        if pp > 0:
            act = jnp.where(rect_mask(blk["conv"]), act, -jnp.inf)
        poffs = [(i * dp) * FW + j * dp for i in range(kp) for j in range(kp)]
        pooled = lane_shift(act, poffs[0])
        for o in poffs[1:]:
            pooled = jnp.maximum(pooled, lane_shift(act, o))
        a = pooled                                # (Coutp_b, L), already x8

    o_ref[0] = a.astype(o_ref.dtype)


# ---------------------------------------------------------------------------
# general (fallback) per-block kernel, used only when a stride != 1
# (review: whole batch in one grid step, channel contraction on the MXU)
# ---------------------------------------------------------------------------
def _general_block_kernel(x_ref, w_ref, b_ref, o_ref, *,
                          KH, KW, Cp, Coutp, OH, OW, PH, PW,
                          conv_stride, conv_dilation, activation,
                          pool_kernel, pool_stride, pool_padding,
                          pool_dilation):
    # TODO(synk): output is still (N, PH, PW, Coutp), i.e. lane-sparse; a fully
    # lane-dense flat-frame rewrite of the strided path is pending.
    N = x_ref.shape[0]
    x = x_ref[...]
    acc = jnp.zeros((N * OH * OW, Coutp), jnp.float32)
    for kh in range(KH):
        for kw in range(KW):
            h0 = kh * conv_dilation
            w0 = kw * conv_dilation
            xs = x[:, h0:h0 + (OH - 1) * conv_stride + 1:conv_stride,
                   w0:w0 + (OW - 1) * conv_stride + 1:conv_stride, :]
            t = kh * KW + kw
            acc = acc + jnp.dot(xs.reshape(N * OH * OW, Cp),
                                w_ref[t * Cp:(t + 1) * Cp, :],
                                preferred_element_type=jnp.float32,
                                precision=jax.lax.Precision.HIGHEST)
    acc = acc + b_ref[...]
    act = _activation(acc, activation).reshape(N, OH, OW, Coutp)
    if pool_padding > 0:
        act = jnp.pad(act, ((0, 0), (pool_padding,) * 2,
                            (pool_padding,) * 2, (0, 0)),
                      constant_values=-jnp.inf)
    pooled = None
    for pk in range(pool_kernel):
        for pq in range(pool_kernel):
            h0 = pk * pool_dilation
            w0 = pq * pool_dilation
            win = act[:, h0:h0 + (PH - 1) * pool_stride + 1:pool_stride,
                      w0:w0 + (PW - 1) * pool_stride + 1:pool_stride, :]
            pooled = win if pooled is None else jnp.maximum(pooled, win)
    o_ref[...] = pooled.astype(o_ref.dtype)


def _general_block_forward(x_nhwc, w_oihw, b, cfg):
    N, H, W, Cin = x_nhwc.shape
    Cout, _, KH, KW = w_oihw.shape
    cs, cpad, cd = cfg["conv_stride"], cfg["conv_padding"], cfg["conv_dilation"]
    pk, ps, pp, pd = (cfg["pool_kernel"], cfg["pool_stride"],
                      cfg["pool_padding"], cfg["pool_dilation"])
    OH = conv2d_output_size(H, KH, cs, cpad, cd)
    OW = conv2d_output_size(W, KW, cs, cpad, cd)
    PH = conv2d_output_size(OH, pk, ps, pp, pd)
    PW = conv2d_output_size(OW, pk, ps, pp, pd)
    Cp, Coutp = _round_up(Cin, 8), _round_up(Cout, 8)
    xp = jnp.pad(x_nhwc.astype(jnp.float32),
                 ((0, 0), (cpad, cpad), (cpad, cpad), (0, Cp - Cin)))
    Hp, Wp = H + 2 * cpad, W + 2 * cpad
    wf = jnp.pad(w_oihw, ((0, Coutp - Cout), (0, Cp - Cin), (0, 0), (0, 0)))
    wf = wf.transpose(2, 3, 1, 0).reshape(KH * KW * Cp, Coutp)
    bf = jnp.pad(b, (0, Coutp - Cout)).reshape(1, Coutp)
    kernel = functools.partial(
        _general_block_kernel, KH=KH, KW=KW, Cp=Cp, Coutp=Coutp,
        OH=OH, OW=OW, PH=PH, PW=PW, conv_stride=cs, conv_dilation=cd,
        activation=cfg["activation"], pool_kernel=pk, pool_stride=ps,
        pool_padding=pp, pool_dilation=pd)
    out = pl.pallas_call(
        kernel,
        out_shape=jax.ShapeDtypeStruct((N, PH, PW, Coutp), jnp.float32),
        grid_spec=pltpu.PrefetchScalarGridSpec(
            num_scalar_prefetch=0,
            grid=(1,),
            in_specs=[
                pl.BlockSpec((N, Hp, Wp, Cp), lambda i: (0, 0, 0, 0)),
                pl.BlockSpec((KH * KW * Cp, Coutp), lambda i: (0, 0)),
                pl.BlockSpec((1, Coutp), lambda i: (0, 0)),
            ],
            out_specs=pl.BlockSpec((N, PH, PW, Coutp),
                                   lambda i: (0, 0, 0, 0)),
        ),
    )(xp, wf, bf)
    return out[..., :Cout].astype(x_nhwc.dtype)


# ---------------------------------------------------------------------------
# CNN module (JAX/Pallas version)
# ---------------------------------------------------------------------------
class CNN:
    def __init__(self, input_channels, n_conv_filters, conv_kernel_sizes,
                 conv_strides, conv_paddings, conv_dilations, activations,
                 max_pool_kernel_sizes, max_pool_strides, max_pool_paddings,
                 max_pool_dilations, key):
        self.input_channels = input_channels
        self.n_conv_filters = [input_channels, *n_conv_filters]
        self.cfgs, self.params = [], []
        for i, (cin, cout) in enumerate(zip(self.n_conv_filters,
                                            self.n_conv_filters[1:])):
            k = conv_kernel_sizes[i]
            key, kw_key, kb_key = jax.random.split(key, 3)
            fan_in = cin * k * k
            bound = 1.0 / (fan_in ** 0.5)
            w = jax.random.uniform(kw_key, (cout, cin, k, k), jnp.float32,
                                   -bound, bound)
            b = jax.random.uniform(kb_key, (cout,), jnp.float32, -bound, bound)
            self.params.append((w, b))
            self.cfgs.append(dict(
                conv_kernel=k, conv_stride=conv_strides[i],
                conv_padding=conv_paddings[i], conv_dilation=conv_dilations[i],
                activation=activations[i],
                pool_kernel=max_pool_kernel_sizes[i],
                pool_stride=max_pool_strides[i],
                pool_padding=max_pool_paddings[i],
                pool_dilation=max_pool_dilations[i]))

        # decoder = nn.Linear(n_conv_filters[-1], 2): defined but NOT used in
        # forward() of the reference module; initialized only for parity.
        key, kdw, kdb = jax.random.split(key, 3)
        dbound = 1.0 / (self.n_conv_filters[-1] ** 0.5)
        self.decoder_w = jax.random.uniform(kdw, (2, self.n_conv_filters[-1]),
                                            jnp.float32, -dbound, dbound)
        self.decoder_b = jax.random.uniform(kdb, (2,), jnp.float32,
                                            -dbound, dbound)

        # --- fused-path static prep (once, not per forward) ------------------
        self._cps = [_round_up(c, 8) for c in self.n_conv_filters[:-1]]
        self._coutps = [_round_up(c, 8) for c in self.n_conv_filters[1:]]
        self._kmax = max(c["conv_kernel"] ** 2 * cp
                         for c, cp in zip(self.cfgs, self._cps))
        self._cmax = max(self._cps + self._coutps)
        # OIHW weights -> (Coutp, KH*KW*Cinp) matching tap-major patch rows,
        # Cout/Cin zero-padded to multiples of 8 on the host (review: no
        # in-kernel channel-pad concats; sublane tiles 8-aligned end to end).
        self._wb_inputs = []
        for (w, b), cinp, coutp in zip(self.params, self._cps, self._coutps):
            cout, cin, kh, kw = w.shape
            wf = jnp.pad(w, ((0, coutp - cout), (0, cinp - cin),
                             (0, 0), (0, 0)))
            wf = wf.transpose(0, 2, 3, 1).reshape(coutp, kh * kw * cinp)
            bf = jnp.pad(b, (0, coutp - cout)).reshape(coutp, 1)
            self._wb_inputs += [wf, bf]

        self._fast_ok = all(c["conv_stride"] == 1 and c["pool_stride"] == 1
                            for c in self.cfgs)

    # -- fused fast path ----------------------------------------------------
    def _forward_fused(self, x):
        N, Cin, H, W = x.shape
        plan = _plan_fast(H, W, self.cfgs)
        FH, FW = plan["FH"], plan["FW"]
        A_r, A_c = plan["A_r"], plan["A_c"]
        IS = FH * FW
        Cp0 = self._cps[0]
        C_last = self.n_conv_filters[-1]
        C_lastp = self._coutps[-1]

        NT, L, vmem_limit = _select_tiling(N, IS, Cp0, C_lastp,
                                           self._kmax, self._cmax)
        Nb = N // NT

        # glue: embed each image at (A_r, A_c) inside a zero (FH, FW) frame and
        # fold (batch-tile images, frame) into the lane axis.
        xf = jnp.pad(x.astype(jnp.float32),
                     ((0, 0), (0, Cp0 - Cin),
                      (A_r, FH - A_r - H), (A_c, FW - A_c - W)))
        if Nb > 1:
            xf = (xf.reshape(NT, Nb, Cp0, IS).transpose(0, 2, 1, 3)
                    .reshape(NT, Cp0, Nb * IS))
        else:
            xf = xf.reshape(NT, Cp0, IS)   # no materializing transpose needed
        if L > Nb * IS:
            xf = jnp.pad(xf, ((0, 0), (0, 0), (0, L - Nb * IS)))

        # frame coordinates of every lane (only used for conv/pool pad masks)
        q = np.arange(L)
        inb = q < Nb * IS
        qq = q % IS
        row_idx = jnp.asarray(np.where(inb, qq // FW, -1),
                              jnp.int32).reshape(1, L)
        col_idx = jnp.asarray(np.where(inb, qq % FW, -1),
                              jnp.int32).reshape(1, L)

        wb_specs = [pl.BlockSpec(arr.shape, lambda t: (0, 0))
                    for arr in self._wb_inputs]

        kernel = functools.partial(
            _fused_encoder_kernel, cfgs=self.cfgs, plan=plan,
            cps=tuple(self._cps), roll_sign=_roll_sign())

        out = pl.pallas_call(
            kernel,
            out_shape=jax.ShapeDtypeStruct((NT, C_lastp, L), jnp.float32),
            grid_spec=pltpu.PrefetchScalarGridSpec(
                num_scalar_prefetch=0,
                grid=(NT,),
                in_specs=[
                    pl.BlockSpec((1, Cp0, L), lambda t: (t, 0, 0)),
                    pl.BlockSpec((1, L), lambda t: (0, 0)),
                    pl.BlockSpec((1, L), lambda t: (0, 0)),
                    *wb_specs,
                ],
                out_specs=pl.BlockSpec((1, C_lastp, L), lambda t: (t, 0, 0)),
                scratch_shapes=[pltpu.VMEM((self._kmax, L), jnp.float32)],
            ),
            compiler_params=pltpu.CompilerParams(
                dimension_semantics=("parallel",),
                vmem_limit_bytes=vmem_limit),
        )(xf, row_idx, col_idx, *self._wb_inputs)

        # glue: crop the valid rect BEFORE transposing back to NCHW (review)
        rf, cf, Hf, Wf = plan["blocks"][-1]["out"]
        y = out[:, :C_last, :Nb * IS].reshape(NT, C_last, Nb, FH, FW)
        y = y[..., rf:rf + Hf, cf:cf + Wf]
        y = jnp.transpose(y, (0, 2, 1, 3, 4)).reshape(N, C_last, Hf, Wf)
        return y.astype(x.dtype)

    def forward(self, x_nchw):
        if self._fast_ok:
            return self._forward_fused(x_nchw)
        # TODO(synk): stride>1 configs use the slower per-block NHWC fallback;
        # a lane-dense flat-frame rewrite of the strided path is pending.
        xh = jnp.transpose(x_nchw, (0, 2, 3, 1))
        for (w, b), cfg in zip(self.params, self.cfgs):
            xh = _general_block_forward(xh, w, b, cfg)
        return jnp.transpose(xh, (0, 3, 1, 2))


# ---------------------------------------------------------------------------
# pure-JAX reference (independent implementation) for verification
# ---------------------------------------------------------------------------
def reference_forward(x_nchw, params, cfgs):
    x = jnp.transpose(x_nchw, (0, 2, 3, 1))
    for (w, b), cfg in zip(params, cfgs):
        w_hwio = jnp.transpose(w, (2, 3, 1, 0))
        y = lax.conv_general_dilated(
            x, w_hwio,
            window_strides=(cfg["conv_stride"],) * 2,
            padding=[(cfg["conv_padding"],) * 2] * 2,
            rhs_dilation=(cfg["conv_dilation"],) * 2,
            dimension_numbers=("NHWC", "HWIO", "NHWC"),
            precision=lax.Precision.HIGHEST)
        y = y + b[None, None, None, :]
        y = _activation(y, cfg["activation"])
        y = lax.reduce_window(
            y, -jnp.inf, lax.max,
            window_dimensions=(1, cfg["pool_kernel"], cfg["pool_kernel"], 1),
            window_strides=(1, cfg["pool_stride"], cfg["pool_stride"], 1),
            padding=[(0, 0), (cfg["pool_padding"],) * 2,
                     (cfg["pool_padding"],) * 2, (0, 0)],
            window_dilation=(1, cfg["pool_dilation"], cfg["pool_dilation"], 1))
        x = y
    return jnp.transpose(x, (0, 3, 1, 2))


def _check(model, x, name):
    out = jax.block_until_ready(model.forward(x))
    ref = jax.block_until_ready(reference_forward(x, model.params, model.cfgs))
    assert out.shape == ref.shape, (name, out.shape, ref.shape)
    err = float(jnp.max(jnp.abs(out - ref)))
    assert jnp.allclose(out, ref, rtol=1e-4, atol=1e-4), (name, err)


# ---------------------------------------------------------------------------
if __name__ == "__main__":
    key = jax.random.PRNGKey(0)
    key, xkey, mkey, xkey2, mkey2 = jax.random.split(key, 5)

    # --- test 1: standard small config --------------------------------------
    model1 = CNN(
        input_channels=4,
        n_conv_filters=[8, 16],
        conv_kernel_sizes=[3, 4],
        conv_strides=[1, 1],
        conv_paddings=[1, 0],
        conv_dilations=[1, 1],
        activations=["relu", "tanh"],
        max_pool_kernel_sizes=[2, 2],
        max_pool_strides=[1, 1],
        max_pool_paddings=[0, 0],
        max_pool_dilations=[1, 1],
        key=mkey,
    )
    x1 = jax.random.normal(xkey, (2, 4, 16, 16), jnp.float32)   # NCHW
    _check(model1, x1, "test1")

    # --- test 2: exercises inner conv padding, pool padding and dilation ----
    model2 = CNN(
        input_channels=3,
        n_conv_filters=[8, 8],
        conv_kernel_sizes=[5, 3],
        conv_strides=[1, 1],
        conv_paddings=[2, 1],
        conv_dilations=[1, 2],
        activations=["elu", "lrelu"],
        max_pool_kernel_sizes=[3, 2],
        max_pool_strides=[1, 1],
        max_pool_paddings=[1, 0],
        max_pool_dilations=[1, 1],
        key=mkey2,
    )
    x2 = jax.random.normal(xkey2, (2, 3, 12, 12), jnp.float32)
    _check(model2, x2, "test2")

    print("KERNEL_OK")
</pallas_src>

<mosaic_0001>
module attributes {stable_mosaic.version = 11 : i64} {
  func.func @_probe(%arg0: memref<8x128xf32, #tpu.memory_space<vmem>>, %arg1: memref<8x128xf32, #tpu.memory_space<vmem>>) attributes {dimension_semantics = [], scalar_prefetch = 0 : i64, scratch_operands = 0 : i64, tpu.core_type = #tpu.core_type<tc>} {
    %c0 = arith.constant 0 : index
    %c0_0 = arith.constant 0 : index
    %0 = vector.load %arg0[%c0, %c0_0] : memref<8x128xf32, #tpu.memory_space<vmem>>, vector<8x128xf32>
    %c1_i32 = arith.constant 1 : i32
    %1 = tpu.dynamic_rotate %0 by %c1_i32 dim 1 : vector<8x128xf32>, i32 -> vector<8x128xf32>
    %c0_1 = arith.constant 0 : index
    %c0_2 = arith.constant 0 : index
    %2 = vector.load %arg1[%c0_1, %c0_2] : memref<8x128xf32, #tpu.memory_space<vmem>>, vector<8x128xf32>
    tpu.vector_store %arg1[%c0_1, %c0_2], %1 {strides = array<i32>} : memref<8x128xf32, #tpu.memory_space<vmem>>, vector<8x128xf32>,
    return
  }
}

</mosaic_0001>

<bundles_post_ra>
// kernel: tpu_custom_call.1
= control target key start
LH: loop header
LB: loop body
LE: loop exit
PB: predicated region body
PF: predicated region fallthrough
CT: control target
= control target key end

     0   :  { %6 = vsyncpa [#allocation3], 0  ;;  %s128_s0 = inlined_call_operand.hbm [shape: f32[8,128], index: 0, kind: input, shape index: {}]   ;;  %s129_s1 = inlined_call_operand.hbm [shape: f32[8,128], index: 1, kind: output, shape index: {}]  }
   0x1   :  { %7 = vsyncpa [#allocation4], 0  ;;  %s91_s6 = smov [#allocation2]   ;;  %s43_s10 = scalar_lea.hbm %s128_s0, 128 }
   0x2   :  { %s14_s7 = sshll.u32 %s91_s6, 4  ;;  %p44_p0 = scmp.ne.s32.totalorder %s128_s0, %s43_s10  ;;  %s15_s7 = int_to_ptr.vmem [resolvable:$true] %s14_s7 }
   0x3   :  { %p47_p1 = scmp.lt.u32.totalorder %s43_s10, %s128_s0 }
   0x5   :  { %p49_p2 = pnand %p47_p1, %p44_p0 }
   0x7   :  { %52 = shalt.err (!%p49_p2)
}
   0x8   :  { %s53_s15 = scalar_lea.vmem %s15_s7, 128  ;;  %p58_p4 = scmp.lt.s32.totalorder %s15_s7, %s15_s7 }
   0x9   :  { %p54_p3 = scmp.ne.s32.totalorder %s15_s7, %s53_s15  ;;  %p59_p5 = scmp.lt.s32.totalorder %s53_s15, %s53_s15 }
   0xb   :  { %p60_p6 = por %p59_p5, %p58_p4 }
   0xd   :  { %p61_p7 = pnand %p60_p6, %p54_p3 }
   0xf   :  { %64 = shalt.err (!%p61_p7)
}
  0x10   :  { %17 = dma.hbm_to_vmem [thread:$0]  %s128_s0, 128, %s15_s7, [#allocation3]  }
  0x11   :  { %87 = dma.done.wait [#allocation3], 128  }
  0x12   :  { %88 = vsyncadd [#allocation3], 4294967168  ;;  %v21_v0 = vld [vmem:[#allocation2] sm:$0xff]  ;;  %s92_s18 = smov 1   ;;  %s93_s19 = smov [#allocation5]  }
  0x13   :  { %22 = vrot.lane.b32.xlu0 %v21_v0, %s92_s18  ;;  %s31_s20 = sshll.u32 %s93_s19, 4  ;;  %s32_s20 = int_to_ptr.vmem [resolvable:$true] %s31_s20 }
  0x14   :  { %s65_s21 = scalar_lea.vmem %s32_s20, 128  ;;  %p70_p9 = scmp.lt.s32.totalorder %s32_s20, %s32_s20 }
  0x15   :  { %p66_p8 = scmp.ne.s32.totalorder %s32_s20, %s65_s21  ;;  %p71_p10 = scmp.lt.s32.totalorder %s65_s21, %s65_s21 }
  0x17   :  { %p72_p11 = por %p71_p10, %p70_p9 }
  0x19   :  { %p73_p12 = pnand %p72_p11, %p66_p8 }
  0x85   :  { %v23_v1 = vpop.permute.xlu0 %22 }
  0x86   :  { %24 = vst [vmem:[#allocation5] sm:$0xff] %v23_v1 }
  0x87   :  { %76 = shalt.err (!%p73_p12)
}
  0x88   :  { %s77_s0 = scalar_lea.hbm %s129_s1, 128 }
  0x89   :  { %p78_p13 = scmp.ne.s32.totalorder %s129_s1, %s77_s0  ;;  %p81_p0 = scmp.lt.u32.totalorder %s77_s0, %s129_s1 }
  0x8b   :  { %p83_p1 = pnand %p81_p0, %p78_p13 }
  0x8d   :  { %86 = shalt.err (!%p83_p1)
}
  0x8e   :  { %34 = dma.vmem_to_hbm [thread:$0]  %s32_s20, 128, %s129_s1, [#allocation4]  }
  0x8f   :  { %89 = dma.done.wait [#allocation4], 128  }
  0x90   :  { %90 = vsyncadd [#allocation4], 4294967168 }
  0x91   :  { %38 = vsyncpa [#allocation3], 1 }
  0x92   :  { %39 = vsyncpa [#allocation4], 1 }

</bundles_post_ra>
